<compile_context>
chip_gen: v7x
topology: tpu7x:2x2x1
jax: 0.10.0
libtpu: 0.0.40
codegen_flags: <defaults>
</compile_context>

<pallas_src>
import functools

import jax
import jax.numpy as jnp
import numpy as np
from jax import lax
from jax.experimental import pallas as pl
from jax.experimental.pallas import tpu as pltpu

LANES = 128
BOXES_PER_ROW = LANES // 4      # 32 interleaved boxes per 128-lane row
CHUNK_ROWS = 16                 # inner-loop chunk: (16, 128) f32 = 2 vregs per operand
MAX_BLOCK_ROWS = 2048           # 1 MiB per input block -> 6 MiB double-buffered


def _round_up(x, m):
    return ((x + m - 1) // m) * m


def _iou_loss_kernel(p_ref, t_ref, w_ref, out_ref, *,
                     n_elems, block_rows, steps_per_core):
    """Per-block body.

    p_ref/t_ref/w_ref : (block_rows, 128) f32 -- interleaved x1,y1,x2,y2 per box
    out_ref           : (3, 128) f32 lane partials for this core:
                        row 0 = sum of -log(iou) over positives
                        row 1 = number of positives
                        row 2 = sum(pred * weight)   (fallback term)
    """
    core = pl.program_id(0)
    step = pl.program_id(1)

    @pl.when(step == 0)
    def _():
        out_ref[...] = jnp.zeros_like(out_ref)

    # Flat f32-element offset of this (unclamped) block.  Redundant blocks (clamped by
    # the index_map onto the last real block) get an offset past 4*N, so the in_range
    # mask below zeroes their whole contribution regardless of the data loaded.
    block_base = (core * steps_per_core + step) * (block_rows * LANES)

    lane = lax.broadcasted_iota(jnp.int32, (CHUNK_ROWS, LANES), 1)
    sub = lax.broadcasted_iota(jnp.int32, (CHUNK_ROWS, LANES), 0)
    local_off = sub * LANES + lane            # flat offset within a chunk
    is_x1 = (lane & 3) == 0                   # one "box lane" per 4 coords

    def body(c, carry):
        loss_acc, npos_acc, fb_acc = carry
        row0 = pl.multiple_of(c * CHUNK_ROWS, CHUNK_ROWS)
        p = p_ref[pl.ds(row0, CHUNK_ROWS), :]
        t = t_ref[pl.ds(row0, CHUNK_ROWS), :]
        w = w_ref[pl.ds(row0, CHUNK_ROWS), :]

        # mask: element belongs to a real (unpadded, in-bounds) box coordinate
        in_range = local_off < (n_elems - block_base - row0 * LANES)

        # bbox_overlaps(..., is_aligned=True) with the legacy "+1" size convention.
        # Lanes 4k,4k+1 of lt hold the intersection top-left; lanes 4k+2,4k+3 of rb its
        # bottom-right.  Rolls (XLU slot, otherwise idle) line everything up on lane 4k.
        lt = jnp.maximum(p, t)
        rb = jnp.minimum(p, t)
        rb2 = pltpu.roll(rb, LANES - 2, 1)                 # lane j <- lane j+2
        wh = jnp.maximum(rb2 - lt + 1.0, 0.0)
        overlap = wh * pltpu.roll(wh, LANES - 1, 1)        # lane 4k: w*h

        pwh = pltpu.roll(p, LANES - 2, 1) - p + 1.0
        area1 = pwh * pltpu.roll(pwh, LANES - 1, 1)
        twh = pltpu.roll(t, LANES - 2, 1) - t + 1.0
        area2 = twh * pltpu.roll(twh, LANES - 1, 1)

        valid = is_x1 & (w > 0.0) & in_range
        ious = overlap / (area1 + area2 - overlap)
        # where-select (NOT multiply) before the log so junk / degenerate lanes
        # (NaN/inf) contribute exactly -log(1) == 0.
        per_box = -jnp.log(jnp.where(valid, ious, 1.0))

        loss_acc = loss_acc + per_box
        npos_acc = npos_acc + valid.astype(jnp.float32)
        # fallback branch term (used only when there are no positives): sum(pred*weight)
        fb_acc = fb_acc + jnp.where(in_range, p * w, 0.0)
        return loss_acc, npos_acc, fb_acc

    zero = jnp.zeros((CHUNK_ROWS, LANES), jnp.float32)
    loss_acc, npos_acc, fb_acc = lax.fori_loop(
        0, block_rows // CHUNK_ROWS, body, (zero, zero, zero))

    out_ref[0:1, :] += jnp.sum(loss_acc, axis=0, keepdims=True)
    out_ref[1:2, :] += jnp.sum(npos_acc, axis=0, keepdims=True)
    out_ref[2:3, :] += jnp.sum(fb_acc, axis=0, keepdims=True)


def iou_loss_pallas(pred, target, weight, *, style="naive", beta=0.2,
                    eps=1e-3, loss_weight=1.0, avg_factor=None):
    """pred, target, weight: (N, 4) arrays. Returns shape (1,) f32 loss."""
    assert style == "naive", "only the default style='naive' is implemented"
    del beta, eps  # unused by the v1.x naive IoU loss path

    n = int(pred.shape[0])
    n_elems = 4 * n

    # Pad boxes to a multiple of 512 (=> rows multiple of CHUNK_ROWS) and reshape
    # row-major (free) to (rows, 128): 32 interleaved boxes per lane row.  The pad is a
    # contiguous copy, elided entirely when N is already aligned; padded elements are
    # masked in-kernel, so their values never matter.
    n_pad = _round_up(max(n, 1), BOXES_PER_ROW * CHUNK_ROWS)
    rows = n_pad // BOXES_PER_ROW

    def pack(x):
        x = jnp.asarray(x, jnp.float32)
        if n_pad != n:
            x = jnp.pad(x, ((0, n_pad - n), (0, 0)))
        return x.reshape(rows, LANES)

    p2d, t2d, w2d = pack(pred), pack(target), pack(weight)

    block_rows = min(MAX_BLOCK_ROWS, rows)
    nblocks = pl.cdiv(rows, block_rows)
    # Leading "parallel" axis: shards the row range across TensorCores on 2-TC chips
    # (v7x); on 1-TC chips (v5e/v6e) it is just a short sequential outer loop.
    ncores = 2 if nblocks >= 2 else 1
    steps_per_core = pl.cdiv(nblocks, ncores)

    def row_block(c, i):
        # Clamp fully-out-of-range blocks onto the last real block; their contribution
        # is zeroed in-kernel via the flat-index bound.
        return (jnp.minimum(c * steps_per_core + i, nblocks - 1), 0)

    kernel = functools.partial(
        _iou_loss_kernel, n_elems=n_elems, block_rows=block_rows,
        steps_per_core=steps_per_core)

    partials = pl.pallas_call(
        kernel,
        out_shape=jax.ShapeDtypeStruct((ncores, 3, LANES), jnp.float32),
        grid_spec=pltpu.PrefetchScalarGridSpec(
            num_scalar_prefetch=0,
            grid=(ncores, steps_per_core),
            in_specs=[
                pl.BlockSpec((block_rows, LANES), row_block),
                pl.BlockSpec((block_rows, LANES), row_block),
                pl.BlockSpec((block_rows, LANES), row_block),
            ],
            out_specs=pl.BlockSpec((None, 3, LANES), lambda c, i: (c, 0, 0)),
        ),
        compiler_params=pltpu.CompilerParams(
            dimension_semantics=("parallel", "arbitrary"),
            allow_input_fusion=[True, True, True],
        ),
        cost_estimate=pl.CostEstimate(
            flops=32 * rows * LANES,
            transcendentals=2 * rows * LANES,
            bytes_accessed=3 * rows * LANES * 4 + ncores * 3 * LANES * 4,
        ),
    )(p2d, t2d, w2d)

    loss_sum = jnp.sum(partials[:, 0, :])
    n_pos = jnp.sum(partials[:, 1, :])
    fallback = jnp.sum(partials[:, 2, :])
    if avg_factor is None:
        denom = n_pos + 1e-6
    else:
        denom = jnp.asarray(avg_factor, jnp.float32)
    total = jnp.where(n_pos > 0.0, loss_sum, fallback) / denom
    # loss_weight applied outside the kernel so a traced value never forces a retrace.
    return (jnp.asarray(loss_weight, jnp.float32) * total).reshape(1)


def iou_loss_ref(pred, target, weight, *, loss_weight=1.0):
    pred = pred.astype(jnp.float32)
    target = target.astype(jnp.float32)
    weight = weight.astype(jnp.float32)
    mask = weight[:, 0] > 0
    n_pos = jnp.sum(mask.astype(jnp.float32))
    avg_factor = n_pos + 1e-6
    lt = jnp.maximum(pred[:, :2], target[:, :2])
    rb = jnp.minimum(pred[:, 2:], target[:, 2:])
    wh = jnp.maximum(rb - lt + 1.0, 0.0)
    overlap = wh[:, 0] * wh[:, 1]
    area1 = (pred[:, 2] - pred[:, 0] + 1.0) * (pred[:, 3] - pred[:, 1] + 1.0)
    area2 = (target[:, 2] - target[:, 0] + 1.0) * (target[:, 3] - target[:, 1] + 1.0)
    ious = overlap / (area1 + area2 - overlap)
    loss = jnp.sum(jnp.where(mask, -jnp.log(ious), 0.0))
    fallback = jnp.sum(pred * weight)
    return (loss_weight * jnp.where(n_pos > 0, loss, fallback) / avg_factor).reshape(1)


if __name__ == "__main__":
    key = jax.random.PRNGKey(0)
    k1, k2, k3, k4 = jax.random.split(key, 4)
    N = 100  # number of boxes (not a multiple of 32 -> exercises the in-kernel masking)

    p_xy = jax.random.uniform(k1, (N, 2), minval=0.0, maxval=50.0)
    p_wh = jax.random.uniform(k2, (N, 2), minval=5.0, maxval=30.0)
    pred = jnp.concatenate([p_xy, p_xy + p_wh], axis=1)            # (N, 4)

    t_xy = p_xy + jax.random.uniform(k3, (N, 2), minval=-3.0, maxval=3.0)
    t_wh = p_wh + jax.random.uniform(k4, (N, 2), minval=-3.0, maxval=3.0)
    target = jnp.concatenate([t_xy, t_xy + t_wh], axis=1)          # (N, 4)

    # binary per-box weights (roughly 2/3 positive), broadcast to 4 coords
    wmask = (jnp.arange(N) % 3 != 0).astype(jnp.float32)
    weight = jnp.tile(wmask[:, None], (1, 4))                      # (N, 4)

    out = iou_loss_pallas(pred, target, weight,
                          style="naive", beta=0.2, eps=0.001, loss_weight=1.0)
    out = jax.block_until_ready(out)

    ref = jax.block_until_ready(iou_loss_ref(pred, target, weight, loss_weight=1.0))
    np.testing.assert_allclose(np.asarray(out), np.asarray(ref), rtol=1e-5, atol=1e-5)

    print("KERNEL_OK")
</pallas_src>

<mosaic_0001>
module attributes {stable_mosaic.version = 11 : i64} {
  func.func @_iou_loss_kernel(%arg0: i32, %arg1: i32, %arg2: memref<16x128xf32, #tpu.memory_space<vmem>>, %arg3: memref<16x128xf32, #tpu.memory_space<vmem>>, %arg4: memref<16x128xf32, #tpu.memory_space<vmem>>, %arg5: memref<1x3x128xf32, #tpu.memory_space<vmem>>) attributes {dimension_semantics = [#tpu.dimension_semantics<parallel>, #tpu.dimension_semantics<arbitrary>], iteration_bounds = array<i64: 1, 1>, scalar_prefetch = 0 : i64, scratch_operands = 0 : i64, tpu.core_type = #tpu.core_type<tc>, window_params = [{transform_indices = @transform_0, window_bounds = array<i64: 16, 128>}, {transform_indices = @transform_1, window_bounds = array<i64: 16, 128>}, {transform_indices = @transform_2, window_bounds = array<i64: 16, 128>}, {transform_indices = @transform_3, window_bounds = array<i64: 1, 3, 128>}]} {
    %c0_i32 = arith.constant 0 : i32
    %0 = arith.cmpi eq, %arg1, %c0_i32 : i32
    %1 = arith.extui %0 : i1 to i32
    %c0_i32_0 = arith.constant 0 : i32
    %2 = arith.cmpi ne, %1, %c0_i32_0 : i32
    scf.if %2 {
      %cst_38 = arith.constant 0.000000e+00 : f32
      %95 = vector.broadcast %cst_38 : f32 to vector<3x128xf32>
      %c0_39 = arith.constant 0 : index
      %c0_40 = arith.constant 0 : index
      %c0_41 = arith.constant 0 : index
      %96 = vector.load %arg5[%c0_39, %c0_40, %c0_41] : memref<1x3x128xf32, #tpu.memory_space<vmem>>, vector<1x3x128xf32>
      %97 = vector.shape_cast %96 : vector<1x3x128xf32> to vector<3x128xf32>
      %98 = vector.shape_cast %95 : vector<3x128xf32> to vector<1x3x128xf32>
      tpu.vector_store %arg5[%c0_39, %c0_40, %c0_41], %98 {strides = array<i32>} : memref<1x3x128xf32, #tpu.memory_space<vmem>>, vector<1x3x128xf32>,
    } else {
    }
    %c1_i32 = arith.constant 1 : i32
    %3 = arith.muli %arg0, %c1_i32 : i32
    %4 = arith.addi %3, %arg1 : i32
    %c2048_i32 = arith.constant 2048 : i32
    %5 = arith.muli %4, %c2048_i32 : i32
    %6 = tpu.iota {dimensions = array<i32: 1>} : vector<16x128xi32>
    %7 = tpu.iota {dimensions = array<i32: 0>} : vector<16x128xi32>
    %c128_i32 = arith.constant 128 : i32
    %8 = vector.broadcast %c128_i32 : i32 to vector<16x128xi32>
    %9 = arith.muli %7, %8 : vector<16x128xi32>
    %10 = arith.addi %9, %6 : vector<16x128xi32>
    %c3_i32 = arith.constant 3 : i32
    %11 = vector.broadcast %c3_i32 : i32 to vector<16x128xi32>
    %12 = arith.andi %6, %11 : vector<16x128xi32>
    %c0_i32_1 = arith.constant 0 : i32
    %13 = vector.broadcast %c0_i32_1 : i32 to vector<16x128xi32>
    %14 = arith.cmpi eq, %12, %13 : vector<16x128xi32>
    %cst = arith.constant 0.000000e+00 : f32
    %15 = vector.broadcast %cst : f32 to vector<16x128xf32>
    %c0_i32_2 = arith.constant 0 : i32
    %c16_i32 = arith.constant 16 : i32
    %16 = arith.muli %c0_i32_2, %c16_i32 : i32
    %17 = tpu.assume_multiple %16, 16 : i32
    %18 = arith.index_cast %17 : i32 to index
    %c0 = arith.constant 0 : index
    %19 = vector.load %arg2[%18, %c0] : memref<16x128xf32, #tpu.memory_space<vmem>>, vector<16x128xf32>
    %20 = arith.index_cast %17 : i32 to index
    %c0_3 = arith.constant 0 : index
    %21 = vector.load %arg3[%20, %c0_3] : memref<16x128xf32, #tpu.memory_space<vmem>>, vector<16x128xf32>
    %22 = arith.index_cast %17 : i32 to index
    %c0_4 = arith.constant 0 : index
    %23 = vector.load %arg4[%22, %c0_4] : memref<16x128xf32, #tpu.memory_space<vmem>>, vector<16x128xf32>
    %c400_i32 = arith.constant 400 : i32
    %24 = arith.subi %c400_i32, %5 : i32
    %c128_i32_5 = arith.constant 128 : i32
    %25 = arith.muli %17, %c128_i32_5 : i32
    %26 = arith.subi %24, %25 : i32
    %27 = vector.broadcast %26 : i32 to vector<16x128xi32>
    %28 = arith.cmpi slt, %10, %27 : vector<16x128xi32>
    %29 = arith.maximumf %19, %21 : vector<16x128xf32>
    %30 = arith.minimumf %19, %21 : vector<16x128xf32>
    %c126_i32 = arith.constant 126 : i32
    %31 = tpu.dynamic_rotate %30 by %c126_i32 dim 1 : vector<16x128xf32>, i32 -> vector<16x128xf32>
    %32 = arith.subf %31, %29 : vector<16x128xf32>
    %cst_6 = arith.constant 1.000000e+00 : f32
    %33 = vector.broadcast %cst_6 : f32 to vector<16x128xf32>
    %34 = arith.addf %32, %33 : vector<16x128xf32>
    %cst_7 = arith.constant 0.000000e+00 : f32
    %35 = vector.broadcast %cst_7 : f32 to vector<16x128xf32>
    %36 = arith.maximumf %34, %35 : vector<16x128xf32>
    %c127_i32 = arith.constant 127 : i32
    %37 = tpu.dynamic_rotate %36 by %c127_i32 dim 1 : vector<16x128xf32>, i32 -> vector<16x128xf32>
    %38 = arith.mulf %36, %37 : vector<16x128xf32>
    %c126_i32_8 = arith.constant 126 : i32
    %39 = tpu.dynamic_rotate %19 by %c126_i32_8 dim 1 : vector<16x128xf32>, i32 -> vector<16x128xf32>
    %40 = arith.subf %39, %19 : vector<16x128xf32>
    %cst_9 = arith.constant 1.000000e+00 : f32
    %41 = vector.broadcast %cst_9 : f32 to vector<16x128xf32>
    %42 = arith.addf %40, %41 : vector<16x128xf32>
    %c127_i32_10 = arith.constant 127 : i32
    %43 = tpu.dynamic_rotate %42 by %c127_i32_10 dim 1 : vector<16x128xf32>, i32 -> vector<16x128xf32>
    %44 = arith.mulf %42, %43 : vector<16x128xf32>
    %c126_i32_11 = arith.constant 126 : i32
    %45 = tpu.dynamic_rotate %21 by %c126_i32_11 dim 1 : vector<16x128xf32>, i32 -> vector<16x128xf32>
    %46 = arith.subf %45, %21 : vector<16x128xf32>
    %cst_12 = arith.constant 1.000000e+00 : f32
    %47 = vector.broadcast %cst_12 : f32 to vector<16x128xf32>
    %48 = arith.addf %46, %47 : vector<16x128xf32>
    %c127_i32_13 = arith.constant 127 : i32
    %49 = tpu.dynamic_rotate %48 by %c127_i32_13 dim 1 : vector<16x128xf32>, i32 -> vector<16x128xf32>
    %50 = arith.mulf %48, %49 : vector<16x128xf32>
    %cst_14 = arith.constant 0.000000e+00 : f32
    %51 = vector.broadcast %cst_14 : f32 to vector<16x128xf32>
    %52 = arith.cmpf ogt, %23, %51 : vector<16x128xf32>
    %53 = arith.andi %14, %52 : vector<16x128xi1>
    %54 = arith.andi %53, %28 : vector<16x128xi1>
    %55 = arith.addf %44, %50 : vector<16x128xf32>
    %56 = arith.subf %55, %38 : vector<16x128xf32>
    %57 = arith.divf %38, %56 : vector<16x128xf32>
    %cst_15 = arith.constant 1.000000e+00 : f32
    %58 = vector.broadcast %cst_15 : f32 to vector<16x128xf32>
    %59 = arith.select %54, %57, %58 : vector<16x128xi1>, vector<16x128xf32>
    %60 = math.log %59 : vector<16x128xf32>
    %cst_16 = arith.constant 0.000000e+00 : f32
    %61 = vector.broadcast %cst_16 : f32 to vector<16x128xf32>
    %62 = arith.subf %61, %60 : vector<16x128xf32>
    %63 = arith.addf %15, %62 : vector<16x128xf32>
    %64 = arith.extui %54 : vector<16x128xi1> to vector<16x128xi32>
    %65 = arith.sitofp %64 : vector<16x128xi32> to vector<16x128xf32>
    %66 = arith.addf %15, %65 : vector<16x128xf32>
    %67 = arith.mulf %19, %23 : vector<16x128xf32>
    %cst_17 = arith.constant 0.000000e+00 : f32
    %68 = vector.broadcast %cst_17 : f32 to vector<16x128xf32>
    %69 = arith.select %28, %67, %68 : vector<16x128xi1>, vector<16x128xf32>
    %70 = arith.addf %15, %69 : vector<16x128xf32>
    %c1_i32_18 = arith.constant 1 : i32
    %c0_19 = arith.constant 0 : index
    %c0_20 = arith.constant 0 : index
    %c0_21 = arith.constant 0 : index
    %71 = vector.load %arg5[%c0_19, %c0_20, %c0_21] : memref<1x3x128xf32, #tpu.memory_space<vmem>>, vector<1x1x128xf32>
    %72 = vector.shape_cast %71 : vector<1x1x128xf32> to vector<1x128xf32>
    %cst_22 = arith.constant dense<0.000000e+00> : vector<128xf32>
    %73 = vector.multi_reduction <add>, %63, %cst_22 [0] : vector<16x128xf32> to vector<128xf32>
    %74 = vector.shape_cast %73 : vector<128xf32> to vector<1x128xf32>
    %75 = arith.addf %72, %74 : vector<1x128xf32>
    %c0_23 = arith.constant 0 : index
    %c0_24 = arith.constant 0 : index
    %c0_25 = arith.constant 0 : index
    %76 = vector.load %arg5[%c0_23, %c0_24, %c0_25] : memref<1x3x128xf32, #tpu.memory_space<vmem>>, vector<1x1x128xf32>
    %77 = vector.shape_cast %76 : vector<1x1x128xf32> to vector<1x128xf32>
    %78 = vector.shape_cast %75 : vector<1x128xf32> to vector<1x1x128xf32>
    tpu.vector_store %arg5[%c0_23, %c0_24, %c0_25], %78 {strides = array<i32>} : memref<1x3x128xf32, #tpu.memory_space<vmem>>, vector<1x1x128xf32>,
    %c0_26 = arith.constant 0 : index
    %c1 = arith.constant 1 : index
    %c0_27 = arith.constant 0 : index
    %79 = vector.load %arg5[%c0_26, %c1, %c0_27] : memref<1x3x128xf32, #tpu.memory_space<vmem>>, vector<1x1x128xf32>
    %80 = vector.shape_cast %79 : vector<1x1x128xf32> to vector<1x128xf32>
    %cst_28 = arith.constant dense<0.000000e+00> : vector<128xf32>
    %81 = vector.multi_reduction <add>, %66, %cst_28 [0] : vector<16x128xf32> to vector<128xf32>
    %82 = vector.shape_cast %81 : vector<128xf32> to vector<1x128xf32>
    %83 = arith.addf %80, %82 : vector<1x128xf32>
    %c0_29 = arith.constant 0 : index
    %c1_30 = arith.constant 1 : index
    %c0_31 = arith.constant 0 : index
    %84 = vector.load %arg5[%c0_29, %c1_30, %c0_31] : memref<1x3x128xf32, #tpu.memory_space<vmem>>, vector<1x1x128xf32>
    %85 = vector.shape_cast %84 : vector<1x1x128xf32> to vector<1x128xf32>
    %86 = vector.shape_cast %83 : vector<1x128xf32> to vector<1x1x128xf32>
    tpu.vector_store %arg5[%c0_29, %c1_30, %c0_31], %86 {strides = array<i32>} : memref<1x3x128xf32, #tpu.memory_space<vmem>>, vector<1x1x128xf32>,
    %c0_32 = arith.constant 0 : index
    %c2 = arith.constant 2 : index
    %c0_33 = arith.constant 0 : index
    %87 = vector.load %arg5[%c0_32, %c2, %c0_33] : memref<1x3x128xf32, #tpu.memory_space<vmem>>, vector<1x1x128xf32>
    %88 = vector.shape_cast %87 : vector<1x1x128xf32> to vector<1x128xf32>
    %cst_34 = arith.constant dense<0.000000e+00> : vector<128xf32>
    %89 = vector.multi_reduction <add>, %70, %cst_34 [0] : vector<16x128xf32> to vector<128xf32>
    %90 = vector.shape_cast %89 : vector<128xf32> to vector<1x128xf32>
    %91 = arith.addf %88, %90 : vector<1x128xf32>
    %c0_35 = arith.constant 0 : index
    %c2_36 = arith.constant 2 : index
    %c0_37 = arith.constant 0 : index
    %92 = vector.load %arg5[%c0_35, %c2_36, %c0_37] : memref<1x3x128xf32, #tpu.memory_space<vmem>>, vector<1x1x128xf32>
    %93 = vector.shape_cast %92 : vector<1x1x128xf32> to vector<1x128xf32>
    %94 = vector.shape_cast %91 : vector<1x128xf32> to vector<1x1x128xf32>
    tpu.vector_store %arg5[%c0_35, %c2_36, %c0_37], %94 {strides = array<i32>} : memref<1x3x128xf32, #tpu.memory_space<vmem>>, vector<1x1x128xf32>,
    return
  }
  func.func @transform_0(%arg0: i32, %arg1: i32) -> (i32, i32) {
    %c1_i32 = arith.constant 1 : i32
    %0 = arith.muli %arg0, %c1_i32 : i32
    %1 = arith.addi %0, %arg1 : i32
    %c0_i32 = arith.constant 0 : i32
    %2 = arith.minsi %1, %c0_i32 : i32
    %c0_i32_0 = arith.constant 0 : i32
    %c0_i32_1 = arith.constant 0 : i32
    return %2, %c0_i32_0 : i32, i32
  }
  func.func @transform_1(%arg0: i32, %arg1: i32) -> (i32, i32) {
    %c1_i32 = arith.constant 1 : i32
    %0 = arith.muli %arg0, %c1_i32 : i32
    %1 = arith.addi %0, %arg1 : i32
    %c0_i32 = arith.constant 0 : i32
    %2 = arith.minsi %1, %c0_i32 : i32
    %c0_i32_0 = arith.constant 0 : i32
    %c0_i32_1 = arith.constant 0 : i32
    return %2, %c0_i32_0 : i32, i32
  }
  func.func @transform_2(%arg0: i32, %arg1: i32) -> (i32, i32) {
    %c1_i32 = arith.constant 1 : i32
    %0 = arith.muli %arg0, %c1_i32 : i32
    %1 = arith.addi %0, %arg1 : i32
    %c0_i32 = arith.constant 0 : i32
    %2 = arith.minsi %1, %c0_i32 : i32
    %c0_i32_0 = arith.constant 0 : i32
    %c0_i32_1 = arith.constant 0 : i32
    return %2, %c0_i32_0 : i32, i32
  }
  func.func @transform_3(%arg0: i32, %arg1: i32) -> (i32, i32, i32) {
    %c0_i32 = arith.constant 0 : i32
    %c0_i32_0 = arith.constant 0 : i32
    %c0_i32_1 = arith.constant 0 : i32
    return %arg0, %c0_i32, %c0_i32_0 : i32, i32, i32
  }
}

</mosaic_0001>

<bundles_post_ra>
// kernel: tpu_custom_call.1
= control target key start
LH: loop header
LB: loop body
LE: loop exit
PB: predicated region body
PF: predicated region fallthrough
CT: control target
= control target key end

     0   :  { %8 = vsyncpa [#allocation3], 0  ;;  %s467_s0 = inlined_call_operand.hbm [shape: f32[16,128], index: 0, kind: input, shape index: {}]   ;;  %s468_s1 = inlined_call_operand.hbm [shape: f32[16,128], index: 1, kind: input, shape index: {}]   ;;  %s469_s2 = inlined_call_operand.hbm [shape: f32[16,128], index: 2, kind: input, shape index: {}]   ;;  %s470_s3 = inlined_call_operand.vmem [shape: f32[1,3,128], index: 3, kind: output, shape index: {}]  }
   0x1   :  { %9 = vsyncpa [#allocation5], 0  ;;  %s329_s12 = smov [#allocation4]   ;;  %s330_s14 = smov [#allocation2]  }
   0x2   :  { %s39_s13 = sshll.u32 %s329_s12, 4  ;;  %s21_s15 = sshll.u32 %s330_s14, 4  ;;  %s40_s13 = int_to_ptr.vmem [resolvable:$true] %s39_s13  ;;  %s357_s15 = int_to_ptr.vmem [resolvable:$true] %s21_s15 }
   0x3   :  { %s259_s18 = scalar_lea.hbm %s468_s1, 256 }
   0x4   :  { %p260_p0 = scmp.ne.s32.totalorder %s468_s1, %s259_s18  ;;  %p263_p1 = scmp.lt.u32.totalorder %s259_s18, %s468_s1 }
   0x6   :  { %p265_p2 = pnand %p263_p1, %p260_p0 }
   0x8   :  { %268 = shalt.err (!%p265_p2)
}
   0x9   :  { %s269_s23 = scalar_lea.vmem %s40_s13, 256  ;;  %p274_p4 = scmp.lt.s32.totalorder %s40_s13, %s40_s13 }
   0xa   :  { %p270_p3 = scmp.ne.s32.totalorder %s40_s13, %s269_s23  ;;  %p275_p5 = scmp.lt.s32.totalorder %s269_s23, %s269_s23 }
   0xc   :  { %p276_p6 = por %p275_p5, %p274_p4 }
   0xe   :  { %p277_p7 = pnand %p276_p6, %p270_p3 }
  0x10   :  { %280 = shalt.err (!%p277_p7)
}
  0x11   :  { %s331_s24 = smov 128   ;;  %s332_s25 = smov 8  }
  0x12   :  { %45 = dma.hbm_to_vmem [thread:$0]  %s468_s1, 256, %s40_s13, [#allocation5], %s331_s24, %s331_s24, %s332_s25  }
  0x13   :  { %s281_s30 = scalar_lea.hbm %s467_s0, 256 }
  0x14   :  { %p282_p8 = scmp.ne.s32.totalorder %s467_s0, %s281_s30  ;;  %p285_p9 = scmp.lt.u32.totalorder %s281_s30, %s467_s0 }
  0x16   :  { %p287_p10 = pnand %p285_p9, %p282_p8 }
  0x18   :  { %290 = shalt.err (!%p287_p10)
}
  0x19   :  { %s291_s8 = scalar_lea.vmem %s357_s15, 256  ;;  %p296_p12 = scmp.lt.s32.totalorder %s357_s15, %s357_s15 }
  0x1a   :  { %p292_p11 = scmp.ne.s32.totalorder %s357_s15, %s291_s8  ;;  %p297_p13 = scmp.lt.s32.totalorder %s291_s8, %s291_s8 }
  0x1c   :  { %p298_p0 = por %p297_p13, %p296_p12 }
  0x1e   :  { %p299_p1 = pnand %p298_p0, %p292_p11 }
  0x20   :  { %302 = shalt.err (!%p299_p1)
}
  0x21   :  { %27 = dma.hbm_to_vmem [thread:$0]  %s467_s0, 256, %s357_s15, [#allocation3], %s331_s24, %s331_s24, %s332_s25  }
  0x22   :  { %s333_s10 = smov [#allocation6]   ;;  %s303_s14 = scalar_lea.hbm %s469_s2, 256 }
  0x23   :  { %s57_s11 = sshll.u32 %s333_s10, 4  ;;  %p304_p2 = scmp.ne.s32.totalorder %s469_s2, %s303_s14  ;;  %s58_s11 = int_to_ptr.vmem [resolvable:$true] %s57_s11 }
  0x24   :  { %p307_p3 = scmp.lt.u32.totalorder %s303_s14, %s469_s2 }
  0x26   :  { %p309_p4 = pnand %p307_p3, %p304_p2 }
  0x28   :  { %312 = shalt.err (!%p309_p4)
}
  0x29   :  { %s313_s20 = scalar_lea.vmem %s58_s11, 256  ;;  %p318_p6 = scmp.lt.s32.totalorder %s58_s11, %s58_s11 }
  0x2a   :  { %p314_p5 = scmp.ne.s32.totalorder %s58_s11, %s313_s20  ;;  %p319_p7 = scmp.lt.s32.totalorder %s313_s20, %s313_s20 }
  0x2c   :  { %p320_p8 = por %p319_p7, %p318_p6 }
  0x2e   :  { %p321_p9 = pnand %p320_p8, %p314_p5 }
  0x30   :  { %324 = shalt.err (!%p321_p9)
}
  0x31   :  { %63 = dma.hbm_to_vmem [thread:$0]  %s469_s2, 256, %s58_s11, [#allocation5], %s331_s24, %s331_s24, %s332_s25  }
  0x32   :  { %325 = dma.done.wait [#allocation3], 256  }
  0x33   :  { %326 = vsyncadd [#allocation3], 4294967040 }
  0x34   :  { %327 = dma.done.wait [#allocation5], 512  }
  0x35   :  { %328 = vsyncadd [#allocation5], 4294966784  ;;  %v409_v0 = vld [vmem:[#allocation2] sm:$0xff]  ;;  %v105_v1 = vld [vmem:[#allocation4] sm:$0xff]  ;;  %s334_s21 = smov 126   ;;  %s335_s2 = smov 127   ;;  %v92_v21 = vlaneseq }
  0x36   :  { %v104_v2 = vld [vmem:[#allocation2 + $0x8] sm:$0xff]  ;;  %135 = vrot.lane.b32.xlu1 %v409_v0, %s334_s21  ;;  %v117_v3 = vmin.f32 %v409_v0, %v105_v1  ;;  %v106_v4 = vld [vmem:[#allocation4 + $0x8] sm:$0xff]  ;;  %v115_v12 = vmax.f32 %v409_v0, %v105_v1  ;;  %v336_v14 = vmov 0.0   ;;  %v107_v38 = vld [vmem:[#allocation6] sm:$0xff] }
  0x37   :  { %v118_v5 = vmin.f32 %v104_v2, %v106_v4  ;;  %v116_v10 = vmax.f32 %v104_v2, %v106_v4  ;;  %89 = vst [vmem:[%s470_s3] sm:$0x7] %v336_v14  ;;  %v95_v28 = vshrl.u32 %v92_v21, 7  ;;  %v93_v32 = vand.u32 127, %v92_v21  ;;  %v108_v35 = vld [vmem:[#allocation6 + $0x8] sm:$0xff] }
  0x38   :  { %119 = vrot.lane.b32.xlu0 %v117_v3, %s334_s21  ;;  %vm164_vm1 = vcmp.gt.f32.partialorder %v108_v35, 0.0  ;;  %vm163_vm2 = vcmp.gt.f32.partialorder %v107_v38, 0.0  ;;  %v194_v40 = vmul.f32 %v108_v35, %v104_v2  ;;  %v193_v46 = vmul.f32 %v107_v38, %v409_v0 }
  0x39   :  { %v96_v31 = vadd.s32 8, %v95_v28  ;;  %v101_v34 = vand.u32 3, %v93_v32  ;;  %v97_v36 = vmul.u32 128, %v95_v28 }
  0x3a   :  { %137 = vrot.lane.b32.xlu1 %v104_v2, %s334_s21 }
  0x3b   :  { %v98_v33 = vmul.u32 128, %v96_v31  ;;  %vm102_vm0 = vcmp.eq.s32.totalorder %v101_v34, 0  ;;  %v99_v39 = vadd.s32 %v97_v36, %v93_v32 }
  0x3c   :  { %121 = vrot.lane.b32.xlu0 %v118_v5, %s334_s21  ;;  %vm166_vm4 = vmand %vm102_vm0, %vm164_vm1 }
  0x3d   :  { %v100_v37 = vadd.s32 %v98_v33, %v93_v32  ;;  %vm113_vm5 = vcmp.lt.s32.totalorder %v99_v39, 400  ;;  %vm165_vm6 = vmand %vm102_vm0, %vm163_vm2 }
  0x3e   :  { %151 = vrot.lane.b32.xlu1 %v106_v4, %s334_s21  ;;  %vm436_vm8 = vmand %vm165_vm6, %vm113_vm5  ;;  %v195_v48 = vsel %vm113_vm5, %v193_v46, 0.0  ;;  %v209_v62 = vld [vmem:[%s470_s3 + $0x1] sm:$0x1]  ;;  %v219_v63 = vld [vmem:[%s470_s3 + $0x2] sm:$0x1] }
  0x3f   :  { %vm114_vm3 = vcmp.lt.s32.totalorder %v100_v37, 400  ;;  %v241_v45 = vsel %vm436_vm8, 1.0, %v336_v14  ;;  %v199_v36 = vld [vmem:[%s470_s3] sm:$0x1] }
  0x40   :  { %149 = vrot.lane.b32.xlu0 %v105_v1, %s334_s21  ;;  %vm430_vm7 = vmand %vm166_vm4, %vm114_vm3  ;;  %v196_v44 = vsel %vm114_vm3, %v194_v40, 0.0 }
  0x41   :  { %v242_v42 = vsel %vm430_vm7, 1.0, %v336_v14  ;;  %v220_v50 = vadd.f32 %v196_v44, %v195_v48 }
  0x42   :  { %v210_v47 = vadd.f32 %v242_v42, %v241_v45 }
  0x43   :  { %v221_v52 = vrot.slane %v220_v50, 4 }
  0x44   :  { %v211_v49 = vrot.slane %v210_v47, 4 }
  0x45   :  { %v222_v54 = vadd.f32 %v221_v52, %v220_v50 }
  0x46   :  { %v212_v51 = vadd.f32 %v211_v49, %v210_v47 }
  0x47   :  { %v223_v56 = vrot.slane %v222_v54, 2 }
  0x48   :  { %v213_v53 = vrot.slane %v212_v51, 2 }
  0x49   :  { %v224_v58 = vadd.f32 %v223_v56, %v222_v54 }
  0x4a   :  { %v214_v55 = vadd.f32 %v213_v53, %v212_v51 }
  0x4b   :  { %v225_v59 = vrot.slane %v224_v58, 1 }
  0x4c   :  { %v215_v57 = vrot.slane %v214_v55, 1 }
  0x4d   :  { %v226_v61 = vadd.f32 %v225_v59, %v224_v58 }
  0x4e   :  { %v216_v60 = vadd.f32 %v215_v57, %v214_v55 }
  0xa8   :  { %v136_v6 = vpop.permute.xlu1 %135 }
  0xa9   :  { %v139_v7 = vsub.f32 %v136_v6, %v409_v0  ;;  %v217_v0 = vadd.f32 %v216_v60, %v209_v62 }
  0xaa   :  { %v120_v8 = vpop.permute.xlu0 %119 }
  0xab   :  { %v414_v9 = vadd.f32 1.0, %v139_v7  ;;  %v123_v19 = vsub.f32 %v120_v8, %v115_v12  ;;  %218 = vst [vmem:[%s470_s3 + $0x1] sm:$0x1] %v217_v0 }
  0xac   :  { %v138_v11 = vpop.permute.xlu1 %137 }
  0xad   :  { %v140_v13 = vsub.f32 %v138_v11, %v104_v2  ;;  %143 = vrot.lane.b32.xlu0 %v414_v9, %s335_s2  ;;  %v426_v26 = vadd.f32 1.0, %v123_v19 }
  0xae   :  { %v122_v15 = vpop.permute.xlu0 %121 }
  0xaf   :  { %v421_v16 = vadd.f32 1.0, %v140_v13  ;;  %v124_v17 = vsub.f32 %v122_v15, %v116_v10  ;;  %v127_v30 = vmax.f32 %v426_v26, 0.0 }
  0xb0   :  { %v152_v18 = vpop.permute.xlu1 %151 }
  0xb1   :  { %v154_v20 = vsub.f32 %v152_v18, %v106_v4  ;;  %145 = vrot.lane.b32.xlu1 %v421_v16, %s335_s2  ;;  %v424_v23 = vadd.f32 1.0, %v124_v17 }
  0xb2   :  { %v150_v22 = vpop.permute.xlu0 %149 }
  0xb3   :  { %v156_v24 = vadd.f32 1.0, %v154_v20  ;;  %v153_v25 = vsub.f32 %v150_v22, %v105_v1  ;;  %v128_v29 = vmax.f32 %v424_v23, 0.0  ;;  %v227_v1 = vadd.f32 %v226_v61, %v219_v63 }
  0xb5   :  { %v155_v27 = vadd.f32 1.0, %v153_v25  ;;  %159 = vrot.lane.b32.xlu1 %v156_v24, %s335_s2  ;;  %228 = vst [vmem:[%s470_s3 + $0x2] sm:$0x1] %v227_v1 }
  0xb7   :  { %157 = vrot.lane.b32.xlu0 %v155_v27, %s335_s2 }
  0xb9   :  { %131 = vrot.lane.b32.xlu1 %v128_v29, %s335_s2 }
  0xbb   :  { %129 = vrot.lane.b32.xlu0 %v127_v30, %s335_s2 }
 0x11f   :  { %v144_v3 = vpop.permute.xlu0 %143 }
 0x120   :  { %v147_v11 = vmul.f32 %v144_v3, %v414_v9 }
 0x123   :  { %v146_v2 = vpop.permute.xlu1 %145 }
 0x124   :  { %v148_v7 = vmul.f32 %v146_v2, %v421_v16 }
 0x127   :  { %v160_v4 = vpop.permute.xlu1 %159 }
 0x128   :  { %v162_v5 = vmul.f32 %v160_v4, %v156_v24 }
 0x129   :  { %v158_v6 = vpop.permute.xlu0 %157 }
 0x12a   :  { %v161_v8 = vmul.f32 %v158_v6, %v155_v27  ;;  %v170_v12 = vadd.f32 %v162_v5, %v148_v7 }
 0x12b   :  { %v132_v10 = vpop.permute.xlu1 %131 }
 0x12c   :  { %v134_v13 = vmul.f32 %v132_v10, %v128_v29  ;;  %v169_v15 = vadd.f32 %v161_v8, %v147_v11 }
 0x12d   :  { %v130_v14 = vpop.permute.xlu0 %129 }
 0x12e   :  { %v172_v17 = vsub.f32 %v170_v12, %v134_v13  ;;  %v133_v18 = vmul.f32 %v130_v14, %v127_v30 }
 0x130   :  { %251 = vrcp.f32 %v172_v17  ;;  %v171_v19 = vsub.f32 %v169_v15, %v133_v18 }
 0x132   :  { %253 = vrcp.f32 %v171_v19 }
 0x13a   :  { %v252_v20 = vpop.eup %251 }
 0x13b   :  { %v176_v21 = vmul.f32 %v252_v20, %v134_v13 }
 0x13c   :  { %v254_v22 = vpop.eup %253 }
 0x13d   :  { %v178_v23 = vsel %vm430_vm7, %v176_v21, 1.0  ;;  %v174_v16 = vmul.f32 %v254_v22, %v133_v18 }
 0x13e   :  { %255 = vlog2.f32 %v178_v23 }
 0x13f   :  { %v177_v9 = vsel %vm436_vm8, %v174_v16, 1.0 }
 0x140   :  { %257 = vlog2.f32 %v177_v9 }
 0x148   :  { %v256_v24 = vpop.eup %255 }
 0x149   :  { %v182_v25 = vmul.f32 0.6931472, %v256_v24 }
 0x14a   :  { %v258_v26 = vpop.eup %257 }
 0x14b   :  { %v180_v27 = vmul.f32 0.6931472, %v258_v26  ;;  %v184_v28 = vsub.f32 0.0, %v182_v25 }
 0x14d   :  { %v183_v29 = vsub.f32 0.0, %v180_v27 }
 0x14f   :  { %v200_v30 = vadd.f32 %v184_v28, %v183_v29 }
 0x151   :  { %v201_v31 = vrot.slane %v200_v30, 4 }
 0x153   :  { %v202_v32 = vadd.f32 %v201_v31, %v200_v30 }
 0x155   :  { %v203_v33 = vrot.slane %v202_v32, 2 }
 0x157   :  { %v204_v34 = vadd.f32 %v203_v33, %v202_v32 }
 0x159   :  { %v205_v35 = vrot.slane %v204_v34, 1 }
 0x15b   :  { %v206_v37 = vadd.f32 %v205_v35, %v204_v34 }
 0x15d   :  { %v207_v38 = vadd.f32 %v206_v37, %v199_v36 }
 0x15f   :  { %208 = vst [vmem:[%s470_s3] sm:$0x1] %v207_v38 }
 0x160   :  { %233 = vsyncpa [#allocation3], 1 }
 0x161   :  { %234 = vsyncpa [#allocation5], 1 }

</bundles_post_ra>
